<compile_context>
chip_gen: v7x
topology: tpu7x:2x2x1
jax: 0.10.0
libtpu: 0.0.40
codegen_flags: <defaults>
</compile_context>

<pallas_src>
import numpy as np

import jax
import jax.numpy as jnp
from jax.experimental import pallas as pl
from jax.experimental.pallas import tpu as pltpu

_LANE = 128
_SUBLANE = 8


def _round_up(x, m):
    return ((x + m - 1) // m) * m


def _round_down(x, m):
    return (x // m) * m


def _vmem_capacity_bytes(default=64 << 20):
    """Physical VMEM of the local chip; conservative default if unavailable."""
    try:
        info = pltpu.get_tpu_info()
        cap = getattr(info, "vmem_capacity_bytes", None)
        if cap:
            return int(cap)
    except Exception:
        pass
    return default


def _drop_path_kernel(scale_ref, x_ref, o_ref):
    # scale_ref: (tile_b, 1) per-sample scale (0 or 1/keep_prob) in x.dtype.
    # x_ref / o_ref: (tile_b, tile_f) tiles; pure VPU multiply, HBM-bound.
    o_ref[...] = (x_ref[...] * scale_ref[...]).astype(o_ref.dtype)


def _choose_tiles(B, F, itemsize, vmem_cap):
    """Pick (tile_b, tile_f) targeting ~2-8 MiB per tile, generation-aware."""
    # ~1/16 of physical VMEM per tile: 8 MiB on 128 MiB parts (v5e/v6e),
    # 4 MiB on 64 MiB v7x.  in+out, double-buffered, stays well within budget.
    target = int(min(8 << 20, max(2 << 20, vmem_cap // 16)))

    # Feature tile: full F when it fits (full-dim block is always legal, no pad),
    # otherwise the largest lane-dense (multiple-of-128) tile leaving >=8 rows.
    tf_cap = max(_LANE, _round_down(target // (_SUBLANE * itemsize), _LANE))
    tile_f = F if F <= tf_cap else tf_cap

    # Batch tile: full B when it fits, otherwise the largest multiple of 8.
    row_bytes = max(1, tile_f * itemsize)
    tb_cap = max(_SUBLANE, _round_down(target // row_bytes, _SUBLANE))
    tile_b = B if B <= tb_cap else tb_cap

    # v7x has 2 TensorCores: if a large-ish array collapses to a 1-step grid,
    # split the feature axis so both cores get work (no effect on tiny inputs).
    n_steps = pl.cdiv(B, tile_b) * pl.cdiv(F, tile_f)
    if n_steps == 1 and B * F * itemsize >= (2 << 20) and F >= 2 * _LANE:
        tile_f = _round_up(pl.cdiv(F, 2), _LANE)

    return tile_b, tile_f


def drop_path_pallas(x, drop_prob=None, *, training=False, seed=0, rng_key=None,
                     donate_x=False):
    """Stochastic depth; matches torch drop_path(x, drop_prob, training)."""
    if drop_prob is None or drop_prob == 0.0 or not training:
        return x  # identity short-circuit, same as the PyTorch module

    keep_prob = 1.0 - float(drop_prob)
    orig_shape = x.shape
    B = int(orig_shape[0])
    F = int(np.prod(orig_shape[1:])) if len(orig_shape) > 1 else 1
    x2 = x.reshape(B, F)
    itemsize = x2.dtype.itemsize

    # Per-sample keep/scale computed once in plain JAX (hoisted out of the
    # kernel): keep iff U >= drop_prob  <=>  Bernoulli(keep_prob), exactly the
    # torch floor(keep_prob + U) semantics. Mask no longer depends on tiling.
    if rng_key is None:
        rng_key = jax.random.PRNGKey(seed)
    keep = jax.random.bernoulli(rng_key, p=keep_prob, shape=(B, 1))
    scale = jnp.where(keep, 1.0 / keep_prob, 0.0).astype(x2.dtype)

    vmem_cap = _vmem_capacity_bytes()
    tile_b, tile_f = _choose_tiles(B, F, itemsize, vmem_cap)
    grid = (pl.cdiv(B, tile_b), pl.cdiv(F, tile_f))

    tile_bytes = tile_b * tile_f * itemsize
    needed = 4 * tile_bytes + 4 * tile_b * itemsize + (2 << 20)
    vmem_limit = int(min(max(needed, 16 << 20), max(32 << 20, (vmem_cap * 3) // 4)))

    out = pl.pallas_call(
        _drop_path_kernel,
        out_shape=jax.ShapeDtypeStruct((B, F), x2.dtype),
        grid=grid,
        in_specs=[
            pl.BlockSpec((tile_b, 1), lambda bi, fi: (bi, 0)),        # scale
            pl.BlockSpec((tile_b, tile_f), lambda bi, fi: (bi, fi)),  # x
        ],
        out_specs=pl.BlockSpec((tile_b, tile_f), lambda bi, fi: (bi, fi)),
        # When the caller donates x, write the result in place (x is input 1).
        input_output_aliases=({1: 0} if donate_x else {}),
        compiler_params=pltpu.CompilerParams(
            dimension_semantics=("parallel", "parallel"),
            vmem_limit_bytes=vmem_limit,
        ),
        cost_estimate=pl.CostEstimate(
            flops=B * F,
            transcendentals=0,
            bytes_accessed=2 * B * F * itemsize + B * itemsize,
        ),
    )(scale, x2)

    return out.reshape(orig_shape)


def _check_drop_path_property(x, y, drop_prob, rtol=1e-6, atol=1e-6):
    """Every sample must be either all-zero (dropped) or x / keep_prob (kept)."""
    keep_prob = 1.0 - drop_prob
    xf = np.asarray(x, dtype=np.float32).reshape(x.shape[0], -1)
    yf = np.asarray(y, dtype=np.float32).reshape(y.shape[0], -1)
    dropped = np.all(yf == 0.0, axis=1)
    kept = np.all(np.isclose(yf, xf / keep_prob, rtol=rtol, atol=atol), axis=1)
    assert np.all(dropped | kept), "sample neither dropped nor scaled by 1/keep_prob"


if __name__ == "__main__":
    key = jax.random.PRNGKey(0)
    # Primary example: conv-style activation (B, C, H, W) = (2, 4, 16, 16)
    x = jax.random.normal(key, (2, 4, 16, 16), dtype=jnp.float32)
    p = 0.3

    # Eval mode (and drop_prob == 0) -> identity, exactly like the PyTorch module.
    y_eval = drop_path_pallas(x, p, training=False)
    assert bool(jnp.array_equal(y_eval, x))
    assert bool(jnp.array_equal(drop_path_pallas(x, 0.0, training=True), x))

    # Training mode: per-sample stochastic depth via the Pallas kernel.
    y = jax.block_until_ready(drop_path_pallas(x, p, training=True, seed=123))
    assert y.shape == x.shape and y.dtype == x.dtype
    _check_drop_path_property(x, y, p)

    # Determinism: same seed -> identical mask/output (tiling-independent now).
    y2 = jax.block_until_ready(drop_path_pallas(x, p, training=True, seed=123))
    assert bool(jnp.array_equal(y, y2))

    # Transformer-style activation (B, S, D); lane-dense feature slab.
    k2, k3, k4 = jax.random.split(jax.random.PRNGKey(1), 3)
    xb = jax.random.normal(k2, (16, 64, 96), dtype=jnp.float32)
    yb = jax.block_until_ready(drop_path_pallas(xb, 0.5, training=True, seed=7))
    _check_drop_path_property(xb, yb, 0.5)

    # Flattened feature dim (250) not a multiple of 128: no pad/slice round-trip,
    # full-dim feature block handles it directly.
    xp = jax.random.normal(k3, (3, 5, 50), dtype=jnp.float32)
    yp = jax.block_until_ready(drop_path_pallas(xp, 0.25, training=True, seed=11))
    assert yp.shape == xp.shape
    _check_drop_path_property(xp, yp, 0.25)

    # bf16 path: scale is applied in x.dtype (keep_prob=0.5 -> exact 2x scale).
    xh = jax.random.normal(k4, (8, 3, 224), dtype=jnp.bfloat16)
    yh = jax.block_until_ready(drop_path_pallas(xh, 0.5, training=True, seed=5))
    assert yh.dtype == xh.dtype
    _check_drop_path_property(xh, yh, 0.5, rtol=1e-2, atol=1e-2)

    print("KERNEL_OK")
</pallas_src>

<mosaic_0001>
module attributes {stable_mosaic.version = 11 : i64} {
  func.func @_drop_path_kernel(%arg0: i32, %arg1: i32, %arg2: memref<2x1xf32, #tpu.memory_space<vmem>>, %arg3: memref<2x1024xf32, #tpu.memory_space<vmem>>, %arg4: memref<2x1024xf32, #tpu.memory_space<vmem>>) attributes {dimension_semantics = [#tpu.dimension_semantics<parallel>, #tpu.dimension_semantics<parallel>], iteration_bounds = array<i64: 1, 1>, scalar_prefetch = 0 : i64, scratch_operands = 0 : i64, tpu.core_type = #tpu.core_type<tc>, window_params = [{transform_indices = @transform_0, window_bounds = array<i64: 2, 1>}, {transform_indices = @transform_1, window_bounds = array<i64: 2, 1024>}, {transform_indices = @transform_2, window_bounds = array<i64: 2, 1024>}]} {
    %c0 = arith.constant 0 : index
    %c0_0 = arith.constant 0 : index
    %0 = vector.load %arg3[%c0, %c0_0] : memref<2x1024xf32, #tpu.memory_space<vmem>>, vector<2x1024xf32>
    %c0_1 = arith.constant 0 : index
    %c0_2 = arith.constant 0 : index
    %1 = vector.load %arg2[%c0_1, %c0_2] : memref<2x1xf32, #tpu.memory_space<vmem>>, vector<2x1xf32>
    %2 = vector.broadcast %1 : vector<2x1xf32> to vector<2x1024xf32>
    %3 = arith.mulf %0, %2 : vector<2x1024xf32>
    %c0_3 = arith.constant 0 : index
    %c0_4 = arith.constant 0 : index
    %4 = vector.load %arg4[%c0_3, %c0_4] : memref<2x1024xf32, #tpu.memory_space<vmem>>, vector<2x1024xf32>
    tpu.vector_store %arg4[%c0_3, %c0_4], %3 {strides = array<i32>} : memref<2x1024xf32, #tpu.memory_space<vmem>>, vector<2x1024xf32>,
    return
  }
  func.func @transform_0(%arg0: i32, %arg1: i32) -> (i32, i32) {
    %c0_i32 = arith.constant 0 : i32
    %c0_i32_0 = arith.constant 0 : i32
    return %arg0, %c0_i32 : i32, i32
  }
  func.func @transform_1(%arg0: i32, %arg1: i32) -> (i32, i32) {
    %c0_i32 = arith.constant 0 : i32
    return %arg0, %arg1 : i32, i32
  }
  func.func @transform_2(%arg0: i32, %arg1: i32) -> (i32, i32) {
    %c0_i32 = arith.constant 0 : i32
    return %arg0, %arg1 : i32, i32
  }
}

</mosaic_0001>

<bundles_post_ra>
// kernel: tpu_custom_call.1
= control target key start
LH: loop header
LB: loop body
LE: loop exit
PB: predicated region body
PF: predicated region fallthrough
CT: control target
= control target key end

     0   :  { %7 = vsyncpa [#allocation3], 0  ;;  %s157_s0 = inlined_call_operand.vmem [shape: f32[2,1], index: 0, kind: input, shape index: {}]   ;;  %s158_s1 = inlined_call_operand.hbm [shape: f32[2,1024], index: 1, kind: input, shape index: {}]   ;;  %s159_s2 = inlined_call_operand.hbm [shape: f32[2,1024], index: 2, kind: output, shape index: {}]  }
   0x1   :  { %8 = vsyncpa [#allocation4], 0  ;;  %s111_s9 = smov [#allocation2]   ;;  %s63_s13 = scalar_lea.hbm %s158_s1, 256 }
   0x2   :  { %s17_s10 = sshll.u32 %s111_s9, 4  ;;  %p64_p0 = scmp.ne.s32.totalorder %s158_s1, %s63_s13  ;;  %s18_s10 = int_to_ptr.vmem [resolvable:$true] %s17_s10 }
   0x3   :  { %p67_p1 = scmp.lt.u32.totalorder %s63_s13, %s158_s1 }
   0x5   :  { %p69_p2 = pnand %p67_p1, %p64_p0 }
   0x7   :  { %72 = shalt.err (!%p69_p2)
}
   0x8   :  { %s73_s18 = scalar_lea.vmem %s18_s10, 256  ;;  %p78_p4 = scmp.lt.s32.totalorder %s18_s10, %s18_s10 }
   0x9   :  { %p74_p3 = scmp.ne.s32.totalorder %s18_s10, %s73_s18  ;;  %p79_p5 = scmp.lt.s32.totalorder %s73_s18, %s73_s18 }
   0xb   :  { %p80_p6 = por %p79_p5, %p78_p4 }
   0xd   :  { %p81_p7 = pnand %p80_p6, %p74_p3 }
   0xf   :  { %84 = shalt.err (!%p81_p7)
}
  0x10   :  { %20 = dma.hbm_to_vmem [thread:$0]  %s158_s1, 256, %s18_s10, [#allocation3]  }
  0x11   :  { %107 = dma.done.wait [#allocation3], 256  }
  0x12   :  { %108 = vsyncadd [#allocation3], 4294967040  ;;  %v112_v0 = vmov 0   ;;  %v26_v1 = vld [vmem:[%s157_s0] sm:$0x3]  ;;  %v34_v4 = vlaneseq  ;;  %v25_v10 = vld [vmem:[#allocation2 + $0x8] sm:$0xff] }
  0x13   :  { %62 = vset.pattern.permute.xlu0 %v112_v0  ;;  %v113_v2 = vmov 269488144   ;;  %v24_v9 = vld [vmem:[#allocation2] sm:$0xff]  ;;  %s114_s23 = smov [#allocation5]  }
  0x14   :  { %29 = vperm.xlu0 %62, %v26_v1   ;;  %v32_v3 = vunpack.c.l.s4 %v113_v2  ;;  %v35_v6 = vshrl.u32 %v34_v4, 7  ;;  %s49_s1 = sshll.u32 %s114_s23, 4  ;;  %s50_s1 = int_to_ptr.vmem [resolvable:$true] %s49_s1 }
  0x15   :  { %s85_s24 = scalar_lea.vmem %s50_s1, 256  ;;  %p90_p9 = scmp.lt.s32.totalorder %s50_s1, %s50_s1 }
  0x16   :  { %v33_v5 = vunpack.c.0.s8 %v32_v3  ;;  %p86_p8 = scmp.ne.s32.totalorder %s50_s1, %s85_s24  ;;  %p91_p10 = scmp.lt.s32.totalorder %s85_s24, %s85_s24 }
  0x18   :  { %v36_v7 = vsub.s32 %v33_v5, %v35_v6  ;;  %p92_p11 = por %p91_p10, %p90_p9 }
  0x1a   :  { %p93_p12 = pnand %p92_p11, %p86_p8 }
  0x93   :  { %v30_v8 = vpop.permute.xlu0 %29 }
  0x94   :  { %v37_v11 = vrot.slane %v30_v8, %v36_v7 }
  0x96   :  { %v39_v12 = vmul.f32 %v37_v11, %v24_v9  ;;  %v40_v13 = vmul.f32 %v37_v11, %v25_v10 }
  0x98   :  { %41 = vst [vmem:[#allocation5] sm:$0xff] %v39_v12  ;;  %42 = vst [vmem:[#allocation5 + $0x8] sm:$0xff] %v40_v13 }
  0x99   :  { %96 = shalt.err (!%p93_p12)
}
  0x9a   :  { %s97_s26 = scalar_lea.hbm %s159_s2, 256 }
  0x9b   :  { %p98_p13 = scmp.ne.s32.totalorder %s159_s2, %s97_s26  ;;  %p101_p0 = scmp.lt.u32.totalorder %s97_s26, %s159_s2 }
  0x9d   :  { %p103_p1 = pnand %p101_p0, %p98_p13 }
  0x9f   :  { %106 = shalt.err (!%p103_p1)
}
  0xa0   :  { %52 = dma.vmem_to_hbm [thread:$0]  %s50_s1, 256, %s159_s2, [#allocation4]  }
  0xa1   :  { %109 = dma.done.wait [#allocation4], 256  }
  0xa2   :  { %110 = vsyncadd [#allocation4], 4294967040 }
  0xa3   :  { %56 = vsyncpa [#allocation3], 1 }
  0xa4   :  { %57 = vsyncpa [#allocation4], 1 }

</bundles_post_ra>
